<compile_context>
chip_gen: v6e
topology: v6e:2x2x1
jax: 0.10.0
libtpu: 0.0.40
codegen_flags: <defaults>
</compile_context>

<pallas_src>
import math

import jax
import jax.numpy as jnp
from jax import lax
from jax.experimental import pallas as pl
from jax.experimental.pallas import tpu as pltpu


# ---------------------------------------------------------------------------
# Fused kernel: durationRNNCellv1 recurrence over the full sequence + fc head.
# ---------------------------------------------------------------------------
def _make_duration_lm_kernel(seq_len, batch_pad):
    """seq_len (S) and padded batch (Bp) are static and closed over."""
    S, Bp = seq_len, batch_pad

    def kernel(emb_ref, mask_ref, h0_ref, wih_ref, whh_ref, bias_ref,
               w1_ref, b1_ref, w2_ref, b2_ref,
               logits_ref, hfin_ref, xw_scr, hseq_scr):
        # ---- hoisted input projection: one big MXU matmul for the whole sequence
        # xw[t*Bp+b, :] = emb[t, b, :] @ W_ih(merged) + (bias_ih + bias_hh)
        xw_scr[...] = (jnp.dot(emb_ref[...], wih_ref[...],
                               preferred_element_type=jnp.float32)
                       + bias_ref[...])

        whh = whh_ref[...]            # [N*H, N*H] block-diagonal, loop-invariant

        def step(t, h_old):
            r = pl.multiple_of(t * Bp, Bp)
            xw = xw_scr[pl.ds(r, Bp), :]        # precomputed x@W_ih + bias  [Bp, N*H]
            m = mask_ref[pl.ds(r, Bp), :]       # precomputed duration gate  [Bp, N*H]
            h_new = jnp.tanh(
                jnp.dot(h_old, whh, preferred_element_type=jnp.float32) + xw)
            # gate: unit n keeps its previous state when n > floor(dur/rescale)
            h_mix = h_new + m * (h_old - h_new)
            hseq_scr[pl.ds(r, Bp), :] = h_mix   # full (8,128)-tile unmasked store
            return h_mix

        unroll = True if S <= 16 else 8
        h_final = lax.fori_loop(0, S, step, h0_ref[...], unroll=unroll)
        hfin_ref[...] = h_final                 # written once, after the loop

        # ---- fc head epilogue: Linear(N*H -> E) -> Tanh -> Linear(E -> Vp)
        # hseq_scr is already the flat [S*Bp, N*H] feature slab (no reshape needed).
        h1 = jnp.tanh(jnp.dot(hseq_scr[...], w1_ref[...],
                              preferred_element_type=jnp.float32) + b1_ref[...])
        logits_ref[...] = (jnp.dot(h1, w2_ref[...],
                                   preferred_element_type=jnp.float32) + b2_ref[...])

    return kernel


# ---------------------------------------------------------------------------
# durationLM forward (glue: embedding lookup, weight merging, layout plumbing)
# ---------------------------------------------------------------------------
def duration_lm_forward(src, hidden, fix_duration, params, *, rescale_rate):
    if rescale_rate <= 0:
        raise ValueError("rescale_rate must be >= 1 (max_duration // n_hiddens == 0)")

    B, S = src.shape
    N, _, H = hidden.shape
    NH = N * H
    E = params["wih"].shape[1]
    V = params["w2t"].shape[1]
    Vp = ((V + 127) // 128) * 128          # pad vocab to a lane-dense width
    Bp = ((B + 7) // 8) * 8                # pad batch to a sublane-dense width

    # --- tiny XLA-side prep -------------------------------------------------
    emb = params["embedding"][src]                           # [B, S, E] (dropout_emb = id)
    emb_t = jnp.transpose(emb, (1, 0, 2))                    # [S, B, E]  time-major
    emb_p = jnp.pad(emb_t, ((0, 0), (0, Bp - B), (0, 0))).reshape(S * Bp, E)

    # precomputed duration-gate mask for every timestep: [S*Bp, N*H] float32
    fd = (fix_duration // rescale_rate).astype(jnp.int32)    # [B, S]
    fd_t = jnp.pad(jnp.transpose(fd), ((0, 0), (0, Bp - B))) # [S, Bp]
    unit = jnp.arange(NH, dtype=jnp.int32) // H              # [N*H] lane -> unit index
    mask = (unit[None, :] > fd_t.reshape(S * Bp)[:, None]).astype(jnp.float32)

    h0_m = jnp.transpose(hidden, (1, 0, 2)).reshape(B, NH)   # merged state [B, N*H]
    h0_p = jnp.pad(h0_m, ((0, Bp - B), (0, 0)))              # [Bp, N*H]

    wih_m = jnp.transpose(params["wih"], (1, 0, 2)).reshape(E, NH)      # [E, N*H]
    whh_m = jnp.zeros((NH, NH), jnp.float32)                 # block-diagonal weight_hh
    for n in range(N):
        whh_m = whh_m.at[n * H:(n + 1) * H, n * H:(n + 1) * H].set(params["whh"][n])
    bias_m = (params["bih"] + params["bhh"]).reshape(1, NH)             # [1, N*H]

    w2t_p = jnp.pad(params["w2t"], ((0, 0), (0, Vp - V)))    # [E, Vp]
    b2_p = jnp.pad(params["b2"], ((0, 0), (0, Vp - V)))      # [1, Vp]

    vmem = pl.BlockSpec(memory_space=pltpu.MemorySpace.VMEM)
    logits_p, h_final_p = pl.pallas_call(
        _make_duration_lm_kernel(S, Bp),
        out_shape=(jax.ShapeDtypeStruct((S * Bp, Vp), jnp.float32),  # flat dense logits
                   jax.ShapeDtypeStruct((Bp, NH), jnp.float32)),     # final hidden (merged)
        in_specs=[vmem] * 10,
        out_specs=(vmem, vmem),
        scratch_shapes=[pltpu.VMEM((S * Bp, NH), jnp.float32),       # xw slab
                        pltpu.VMEM((S * Bp, NH), jnp.float32)],      # per-step hidden slab
    )(emb_p, mask, h0_p, wih_m, whh_m, bias_m,
      params["w1t"], params["b1"], w2t_p, b2_p)

    logits = jnp.transpose(logits_p.reshape(S, Bp, Vp)[:, :B, :V], (1, 0, 2))  # [B, S, V]
    h_final = jnp.transpose(h_final_p[:B].reshape(B, N, H), (1, 0, 2))         # [N, B, H]
    return logits, h_final


# ---------------------------------------------------------------------------
# Pure-JAX reference of the same math (for verification)
# ---------------------------------------------------------------------------
def reference_forward(src, hidden, fix_duration, params, *, rescale_rate):
    B, S = src.shape
    N, _, H = hidden.shape
    hp = lax.Precision.HIGHEST
    emb = params["embedding"][src]
    h = hidden
    outs = []
    for i in range(S):
        x = emb[:, i, :]
        xn = jnp.broadcast_to(x[None], (N, B, x.shape[-1]))
        ih = jnp.einsum('nbe,neh->nbh', xn, params["wih"], precision=hp) + params["bih"]
        hh = jnp.einsum('nbh,nhk->nbk', h, params["whh"], precision=hp) + params["bhh"]
        h_new = jnp.tanh(ih + hh)
        fd = fix_duration[:, i] // rescale_rate
        mask = (jnp.arange(N)[:, None] > fd[None, :]).astype(jnp.float32)[:, :, None]
        h = h_new * (1.0 - mask) + h * mask
        outs.append(jnp.transpose(h, (1, 0, 2)).reshape(B, N * H))
    feats = jnp.stack(outs, axis=1)
    hfc = jnp.tanh(jnp.dot(feats.reshape(B * S, N * H), params["w1t"], precision=hp)
                   + params["b1"])
    logits = (jnp.dot(hfc, params["w2t"], precision=hp) + params["b2"]).reshape(B, S, -1)
    return logits, h


if __name__ == "__main__":
    # small shapes consistent with the module
    VOCAB, EMB, HID, NHID = 50, 32, 32, 4
    MAX_DURATION = 12
    RESCALE = MAX_DURATION // NHID
    B, S = 2, 8

    key = jax.random.PRNGKey(0)
    ks = jax.random.split(key, 12)
    k_rnn = math.sqrt(1.0 / HID)
    k_fc1 = math.sqrt(1.0 / (NHID * HID))
    k_fc2 = math.sqrt(1.0 / EMB)

    params = {
        "embedding": jax.random.normal(ks[0], (VOCAB, EMB), jnp.float32),
        "wih": jax.random.uniform(ks[1], (NHID, EMB, HID), jnp.float32, -k_rnn, k_rnn),
        "whh": jax.random.uniform(ks[2], (NHID, HID, HID), jnp.float32, -k_rnn, k_rnn),
        "bih": jax.random.uniform(ks[3], (NHID, 1, HID), jnp.float32, -k_rnn, k_rnn),
        "bhh": jax.random.uniform(ks[4], (NHID, 1, HID), jnp.float32, -k_rnn, k_rnn),
        "w1t": jax.random.uniform(ks[5], (NHID * HID, EMB), jnp.float32, -k_fc1, k_fc1),
        "b1": jax.random.uniform(ks[6], (1, EMB), jnp.float32, -k_fc1, k_fc1),
        "w2t": jax.random.uniform(ks[7], (EMB, VOCAB), jnp.float32, -k_fc2, k_fc2),
        "b2": jax.random.uniform(ks[8], (1, VOCAB), jnp.float32, -k_fc2, k_fc2),
    }

    src = jax.random.randint(ks[9], (B, S), 0, VOCAB, dtype=jnp.int32)
    fix_duration = jax.random.randint(ks[10], (B, S), 0, MAX_DURATION, dtype=jnp.int32)
    h0 = jnp.zeros((NHID, B, HID), jnp.float32)          # init_hidden

    logits, h_final = duration_lm_forward(src, h0, fix_duration, params,
                                          rescale_rate=RESCALE)
    logits = jax.block_until_ready(logits)
    h_final = jax.block_until_ready(h_final)

    ref_logits, ref_h = reference_forward(src, h0, fix_duration, params,
                                          rescale_rate=RESCALE)
    assert logits.shape == (B, S, VOCAB) and h_final.shape == (NHID, B, HID)
    assert jnp.allclose(logits, ref_logits, atol=2e-3, rtol=2e-3)
    assert jnp.allclose(h_final, ref_h, atol=2e-3, rtol=2e-3)

    print("KERNEL_OK")
</pallas_src>

<mosaic_0001>
module attributes {stable_mosaic.version = 11 : i64} {
  func.func @kernel(%arg0: memref<64x32xf32, #tpu.memory_space<vmem>>, %arg1: memref<64x128xf32, #tpu.memory_space<vmem>>, %arg2: memref<8x128xf32, #tpu.memory_space<vmem>>, %arg3: memref<32x128xf32, #tpu.memory_space<vmem>>, %arg4: memref<128x128xf32, #tpu.memory_space<vmem>>, %arg5: memref<1x128xf32, #tpu.memory_space<vmem>>, %arg6: memref<128x32xf32, #tpu.memory_space<vmem>>, %arg7: memref<1x32xf32, #tpu.memory_space<vmem>>, %arg8: memref<32x128xf32, #tpu.memory_space<vmem>>, %arg9: memref<1x128xf32, #tpu.memory_space<vmem>>, %arg10: memref<64x128xf32, #tpu.memory_space<vmem>>, %arg11: memref<8x128xf32, #tpu.memory_space<vmem>>, %arg12: memref<64x128xf32, #tpu.memory_space<vmem>>, %arg13: memref<64x128xf32, #tpu.memory_space<vmem>>) attributes {dimension_semantics = [], scalar_prefetch = 0 : i64, scratch_operands = 2 : i64, tpu.core_type = #tpu.core_type<tc>} {
    %c0 = arith.constant 0 : index
    %c0_0 = arith.constant 0 : index
    %0 = vector.load %arg0[%c0, %c0_0] : memref<64x32xf32, #tpu.memory_space<vmem>>, vector<64x32xf32>
    %c0_1 = arith.constant 0 : index
    %c0_2 = arith.constant 0 : index
    %1 = vector.load %arg3[%c0_1, %c0_2] : memref<32x128xf32, #tpu.memory_space<vmem>>, vector<32x128xf32>
    %cst = arith.constant dense<0.000000e+00> : vector<64x128xf32>
    %2 = tpu.matmul %0, %1, %cst {dimension_numbers = #tpu.dot_dimension_numbers<[1], [0], [0], [1], [0, 0, 1, 1], [], []>} : vector<64x32xf32>, vector<32x128xf32>, vector<64x128xf32> -> vector<64x128xf32>
    %c0_3 = arith.constant 0 : index
    %c0_4 = arith.constant 0 : index
    %3 = vector.load %arg5[%c0_3, %c0_4] : memref<1x128xf32, #tpu.memory_space<vmem>>, vector<1x128xf32>
    %4 = vector.broadcast %3 : vector<1x128xf32> to vector<64x128xf32>
    %5 = arith.addf %2, %4 : vector<64x128xf32>
    %c0_5 = arith.constant 0 : index
    %c0_6 = arith.constant 0 : index
    %6 = vector.load %arg12[%c0_5, %c0_6] : memref<64x128xf32, #tpu.memory_space<vmem>>, vector<64x128xf32>
    tpu.vector_store %arg12[%c0_5, %c0_6], %5 {strides = array<i32>} : memref<64x128xf32, #tpu.memory_space<vmem>>, vector<64x128xf32>,
    %c0_7 = arith.constant 0 : index
    %c0_8 = arith.constant 0 : index
    %7 = vector.load %arg4[%c0_7, %c0_8] : memref<128x128xf32, #tpu.memory_space<vmem>>, vector<128x128xf32>
    %c0_9 = arith.constant 0 : index
    %c0_10 = arith.constant 0 : index
    %8 = vector.load %arg2[%c0_9, %c0_10] : memref<8x128xf32, #tpu.memory_space<vmem>>, vector<8x128xf32>
    %c0_i32 = arith.constant 0 : i32
    %c8_i32 = arith.constant 8 : i32
    %9 = arith.muli %c0_i32, %c8_i32 : i32
    %10 = tpu.assume_multiple %9, 8 : i32
    %11 = arith.index_cast %10 : i32 to index
    %c0_11 = arith.constant 0 : index
    %12 = vector.load %arg12[%11, %c0_11] : memref<64x128xf32, #tpu.memory_space<vmem>>, vector<8x128xf32>
    %13 = arith.index_cast %10 : i32 to index
    %c0_12 = arith.constant 0 : index
    %14 = vector.load %arg1[%13, %c0_12] : memref<64x128xf32, #tpu.memory_space<vmem>>, vector<8x128xf32>
    %cst_13 = arith.constant dense<0.000000e+00> : vector<8x128xf32>
    %15 = tpu.matmul %8, %7, %cst_13 {dimension_numbers = #tpu.dot_dimension_numbers<[1], [0], [0], [1], [0, 0, 1, 1], [], []>} : vector<8x128xf32>, vector<128x128xf32>, vector<8x128xf32> -> vector<8x128xf32>
    %16 = arith.addf %15, %12 : vector<8x128xf32>
    %17 = math.tanh %16 : vector<8x128xf32>
    %18 = arith.subf %8, %17 : vector<8x128xf32>
    %19 = arith.mulf %14, %18 : vector<8x128xf32>
    %20 = arith.addf %17, %19 : vector<8x128xf32>
    %21 = arith.index_cast %10 : i32 to index
    %c0_14 = arith.constant 0 : index
    %22 = vector.load %arg13[%21, %c0_14] : memref<64x128xf32, #tpu.memory_space<vmem>>, vector<8x128xf32>
    tpu.vector_store %arg13[%21, %c0_14], %20 {strides = array<i32>} : memref<64x128xf32, #tpu.memory_space<vmem>>, vector<8x128xf32>,
    %c1_i32 = arith.constant 1 : i32
    %c8_i32_15 = arith.constant 8 : i32
    %23 = arith.muli %c1_i32, %c8_i32_15 : i32
    %24 = tpu.assume_multiple %23, 8 : i32
    %25 = arith.index_cast %24 : i32 to index
    %c0_16 = arith.constant 0 : index
    %26 = vector.load %arg12[%25, %c0_16] : memref<64x128xf32, #tpu.memory_space<vmem>>, vector<8x128xf32>
    %27 = arith.index_cast %24 : i32 to index
    %c0_17 = arith.constant 0 : index
    %28 = vector.load %arg1[%27, %c0_17] : memref<64x128xf32, #tpu.memory_space<vmem>>, vector<8x128xf32>
    %cst_18 = arith.constant dense<0.000000e+00> : vector<8x128xf32>
    %29 = tpu.matmul %20, %7, %cst_18 {dimension_numbers = #tpu.dot_dimension_numbers<[1], [0], [0], [1], [0, 0, 1, 1], [], []>} : vector<8x128xf32>, vector<128x128xf32>, vector<8x128xf32> -> vector<8x128xf32>
    %30 = arith.addf %29, %26 : vector<8x128xf32>
    %31 = math.tanh %30 : vector<8x128xf32>
    %32 = arith.subf %20, %31 : vector<8x128xf32>
    %33 = arith.mulf %28, %32 : vector<8x128xf32>
    %34 = arith.addf %31, %33 : vector<8x128xf32>
    %35 = arith.index_cast %24 : i32 to index
    %c0_19 = arith.constant 0 : index
    %36 = vector.load %arg13[%35, %c0_19] : memref<64x128xf32, #tpu.memory_space<vmem>>, vector<8x128xf32>
    tpu.vector_store %arg13[%35, %c0_19], %34 {strides = array<i32>} : memref<64x128xf32, #tpu.memory_space<vmem>>, vector<8x128xf32>,
    %c2_i32 = arith.constant 2 : i32
    %c8_i32_20 = arith.constant 8 : i32
    %37 = arith.muli %c2_i32, %c8_i32_20 : i32
    %38 = tpu.assume_multiple %37, 8 : i32
    %39 = arith.index_cast %38 : i32 to index
    %c0_21 = arith.constant 0 : index
    %40 = vector.load %arg12[%39, %c0_21] : memref<64x128xf32, #tpu.memory_space<vmem>>, vector<8x128xf32>
    %41 = arith.index_cast %38 : i32 to index
    %c0_22 = arith.constant 0 : index
    %42 = vector.load %arg1[%41, %c0_22] : memref<64x128xf32, #tpu.memory_space<vmem>>, vector<8x128xf32>
    %cst_23 = arith.constant dense<0.000000e+00> : vector<8x128xf32>
    %43 = tpu.matmul %34, %7, %cst_23 {dimension_numbers = #tpu.dot_dimension_numbers<[1], [0], [0], [1], [0, 0, 1, 1], [], []>} : vector<8x128xf32>, vector<128x128xf32>, vector<8x128xf32> -> vector<8x128xf32>
    %44 = arith.addf %43, %40 : vector<8x128xf32>
    %45 = math.tanh %44 : vector<8x128xf32>
    %46 = arith.subf %34, %45 : vector<8x128xf32>
    %47 = arith.mulf %42, %46 : vector<8x128xf32>
    %48 = arith.addf %45, %47 : vector<8x128xf32>
    %49 = arith.index_cast %38 : i32 to index
    %c0_24 = arith.constant 0 : index
    %50 = vector.load %arg13[%49, %c0_24] : memref<64x128xf32, #tpu.memory_space<vmem>>, vector<8x128xf32>
    tpu.vector_store %arg13[%49, %c0_24], %48 {strides = array<i32>} : memref<64x128xf32, #tpu.memory_space<vmem>>, vector<8x128xf32>,
    %c3_i32 = arith.constant 3 : i32
    %c8_i32_25 = arith.constant 8 : i32
    %51 = arith.muli %c3_i32, %c8_i32_25 : i32
    %52 = tpu.assume_multiple %51, 8 : i32
    %53 = arith.index_cast %52 : i32 to index
    %c0_26 = arith.constant 0 : index
    %54 = vector.load %arg12[%53, %c0_26] : memref<64x128xf32, #tpu.memory_space<vmem>>, vector<8x128xf32>
    %55 = arith.index_cast %52 : i32 to index
    %c0_27 = arith.constant 0 : index
    %56 = vector.load %arg1[%55, %c0_27] : memref<64x128xf32, #tpu.memory_space<vmem>>, vector<8x128xf32>
    %cst_28 = arith.constant dense<0.000000e+00> : vector<8x128xf32>
    %57 = tpu.matmul %48, %7, %cst_28 {dimension_numbers = #tpu.dot_dimension_numbers<[1], [0], [0], [1], [0, 0, 1, 1], [], []>} : vector<8x128xf32>, vector<128x128xf32>, vector<8x128xf32> -> vector<8x128xf32>
    %58 = arith.addf %57, %54 : vector<8x128xf32>
    %59 = math.tanh %58 : vector<8x128xf32>
    %60 = arith.subf %48, %59 : vector<8x128xf32>
    %61 = arith.mulf %56, %60 : vector<8x128xf32>
    %62 = arith.addf %59, %61 : vector<8x128xf32>
    %63 = arith.index_cast %52 : i32 to index
    %c0_29 = arith.constant 0 : index
    %64 = vector.load %arg13[%63, %c0_29] : memref<64x128xf32, #tpu.memory_space<vmem>>, vector<8x128xf32>
    tpu.vector_store %arg13[%63, %c0_29], %62 {strides = array<i32>} : memref<64x128xf32, #tpu.memory_space<vmem>>, vector<8x128xf32>,
    %c4_i32 = arith.constant 4 : i32
    %c8_i32_30 = arith.constant 8 : i32
    %65 = arith.muli %c4_i32, %c8_i32_30 : i32
    %66 = tpu.assume_multiple %65, 8 : i32
    %67 = arith.index_cast %66 : i32 to index
    %c0_31 = arith.constant 0 : index
    %68 = vector.load %arg12[%67, %c0_31] : memref<64x128xf32, #tpu.memory_space<vmem>>, vector<8x128xf32>
    %69 = arith.index_cast %66 : i32 to index
    %c0_32 = arith.constant 0 : index
    %70 = vector.load %arg1[%69, %c0_32] : memref<64x128xf32, #tpu.memory_space<vmem>>, vector<8x128xf32>
    %cst_33 = arith.constant dense<0.000000e+00> : vector<8x128xf32>
    %71 = tpu.matmul %62, %7, %cst_33 {dimension_numbers = #tpu.dot_dimension_numbers<[1], [0], [0], [1], [0, 0, 1, 1], [], []>} : vector<8x128xf32>, vector<128x128xf32>, vector<8x128xf32> -> vector<8x128xf32>
    %72 = arith.addf %71, %68 : vector<8x128xf32>
    %73 = math.tanh %72 : vector<8x128xf32>
    %74 = arith.subf %62, %73 : vector<8x128xf32>
    %75 = arith.mulf %70, %74 : vector<8x128xf32>
    %76 = arith.addf %73, %75 : vector<8x128xf32>
    %77 = arith.index_cast %66 : i32 to index
    %c0_34 = arith.constant 0 : index
    %78 = vector.load %arg13[%77, %c0_34] : memref<64x128xf32, #tpu.memory_space<vmem>>, vector<8x128xf32>
    tpu.vector_store %arg13[%77, %c0_34], %76 {strides = array<i32>} : memref<64x128xf32, #tpu.memory_space<vmem>>, vector<8x128xf32>,
    %c5_i32 = arith.constant 5 : i32
    %c8_i32_35 = arith.constant 8 : i32
    %79 = arith.muli %c5_i32, %c8_i32_35 : i32
    %80 = tpu.assume_multiple %79, 8 : i32
    %81 = arith.index_cast %80 : i32 to index
    %c0_36 = arith.constant 0 : index
    %82 = vector.load %arg12[%81, %c0_36] : memref<64x128xf32, #tpu.memory_space<vmem>>, vector<8x128xf32>
    %83 = arith.index_cast %80 : i32 to index
    %c0_37 = arith.constant 0 : index
    %84 = vector.load %arg1[%83, %c0_37] : memref<64x128xf32, #tpu.memory_space<vmem>>, vector<8x128xf32>
    %cst_38 = arith.constant dense<0.000000e+00> : vector<8x128xf32>
    %85 = tpu.matmul %76, %7, %cst_38 {dimension_numbers = #tpu.dot_dimension_numbers<[1], [0], [0], [1], [0, 0, 1, 1], [], []>} : vector<8x128xf32>, vector<128x128xf32>, vector<8x128xf32> -> vector<8x128xf32>
    %86 = arith.addf %85, %82 : vector<8x128xf32>
    %87 = math.tanh %86 : vector<8x128xf32>
    %88 = arith.subf %76, %87 : vector<8x128xf32>
    %89 = arith.mulf %84, %88 : vector<8x128xf32>
    %90 = arith.addf %87, %89 : vector<8x128xf32>
    %91 = arith.index_cast %80 : i32 to index
    %c0_39 = arith.constant 0 : index
    %92 = vector.load %arg13[%91, %c0_39] : memref<64x128xf32, #tpu.memory_space<vmem>>, vector<8x128xf32>
    tpu.vector_store %arg13[%91, %c0_39], %90 {strides = array<i32>} : memref<64x128xf32, #tpu.memory_space<vmem>>, vector<8x128xf32>,
    %c6_i32 = arith.constant 6 : i32
    %c8_i32_40 = arith.constant 8 : i32
    %93 = arith.muli %c6_i32, %c8_i32_40 : i32
    %94 = tpu.assume_multiple %93, 8 : i32
    %95 = arith.index_cast %94 : i32 to index
    %c0_41 = arith.constant 0 : index
    %96 = vector.load %arg12[%95, %c0_41] : memref<64x128xf32, #tpu.memory_space<vmem>>, vector<8x128xf32>
    %97 = arith.index_cast %94 : i32 to index
    %c0_42 = arith.constant 0 : index
    %98 = vector.load %arg1[%97, %c0_42] : memref<64x128xf32, #tpu.memory_space<vmem>>, vector<8x128xf32>
    %cst_43 = arith.constant dense<0.000000e+00> : vector<8x128xf32>
    %99 = tpu.matmul %90, %7, %cst_43 {dimension_numbers = #tpu.dot_dimension_numbers<[1], [0], [0], [1], [0, 0, 1, 1], [], []>} : vector<8x128xf32>, vector<128x128xf32>, vector<8x128xf32> -> vector<8x128xf32>
    %100 = arith.addf %99, %96 : vector<8x128xf32>
    %101 = math.tanh %100 : vector<8x128xf32>
    %102 = arith.subf %90, %101 : vector<8x128xf32>
    %103 = arith.mulf %98, %102 : vector<8x128xf32>
    %104 = arith.addf %101, %103 : vector<8x128xf32>
    %105 = arith.index_cast %94 : i32 to index
    %c0_44 = arith.constant 0 : index
    %106 = vector.load %arg13[%105, %c0_44] : memref<64x128xf32, #tpu.memory_space<vmem>>, vector<8x128xf32>
    tpu.vector_store %arg13[%105, %c0_44], %104 {strides = array<i32>} : memref<64x128xf32, #tpu.memory_space<vmem>>, vector<8x128xf32>,
    %c7_i32 = arith.constant 7 : i32
    %c8_i32_45 = arith.constant 8 : i32
    %107 = arith.muli %c7_i32, %c8_i32_45 : i32
    %108 = tpu.assume_multiple %107, 8 : i32
    %109 = arith.index_cast %108 : i32 to index
    %c0_46 = arith.constant 0 : index
    %110 = vector.load %arg12[%109, %c0_46] : memref<64x128xf32, #tpu.memory_space<vmem>>, vector<8x128xf32>
    %111 = arith.index_cast %108 : i32 to index
    %c0_47 = arith.constant 0 : index
    %112 = vector.load %arg1[%111, %c0_47] : memref<64x128xf32, #tpu.memory_space<vmem>>, vector<8x128xf32>
    %cst_48 = arith.constant dense<0.000000e+00> : vector<8x128xf32>
    %113 = tpu.matmul %104, %7, %cst_48 {dimension_numbers = #tpu.dot_dimension_numbers<[1], [0], [0], [1], [0, 0, 1, 1], [], []>} : vector<8x128xf32>, vector<128x128xf32>, vector<8x128xf32> -> vector<8x128xf32>
    %114 = arith.addf %113, %110 : vector<8x128xf32>
    %115 = math.tanh %114 : vector<8x128xf32>
    %116 = arith.subf %104, %115 : vector<8x128xf32>
    %117 = arith.mulf %112, %116 : vector<8x128xf32>
    %118 = arith.addf %115, %117 : vector<8x128xf32>
    %119 = arith.index_cast %108 : i32 to index
    %c0_49 = arith.constant 0 : index
    %120 = vector.load %arg13[%119, %c0_49] : memref<64x128xf32, #tpu.memory_space<vmem>>, vector<8x128xf32>
    tpu.vector_store %arg13[%119, %c0_49], %118 {strides = array<i32>} : memref<64x128xf32, #tpu.memory_space<vmem>>, vector<8x128xf32>,
    %c8_i32_50 = arith.constant 8 : i32
    %c0_51 = arith.constant 0 : index
    %c0_52 = arith.constant 0 : index
    %121 = vector.load %arg11[%c0_51, %c0_52] : memref<8x128xf32, #tpu.memory_space<vmem>>, vector<8x128xf32>
    tpu.vector_store %arg11[%c0_51, %c0_52], %118 {strides = array<i32>} : memref<8x128xf32, #tpu.memory_space<vmem>>, vector<8x128xf32>,
    %c0_53 = arith.constant 0 : index
    %c0_54 = arith.constant 0 : index
    %122 = vector.load %arg13[%c0_53, %c0_54] : memref<64x128xf32, #tpu.memory_space<vmem>>, vector<64x128xf32>
    %c0_55 = arith.constant 0 : index
    %c0_56 = arith.constant 0 : index
    %123 = vector.load %arg6[%c0_55, %c0_56] : memref<128x32xf32, #tpu.memory_space<vmem>>, vector<128x32xf32>
    %cst_57 = arith.constant dense<0.000000e+00> : vector<64x32xf32>
    %124 = tpu.matmul %122, %123, %cst_57 {dimension_numbers = #tpu.dot_dimension_numbers<[1], [0], [0], [1], [0, 0, 1, 1], [], []>} : vector<64x128xf32>, vector<128x32xf32>, vector<64x32xf32> -> vector<64x32xf32>
    %c0_58 = arith.constant 0 : index
    %c0_59 = arith.constant 0 : index
    %125 = vector.load %arg7[%c0_58, %c0_59] : memref<1x32xf32, #tpu.memory_space<vmem>>, vector<1x32xf32>
    %126 = vector.broadcast %125 : vector<1x32xf32> to vector<64x32xf32>
    %127 = arith.addf %124, %126 : vector<64x32xf32>
    %128 = math.tanh %127 : vector<64x32xf32>
    %c0_60 = arith.constant 0 : index
    %c0_61 = arith.constant 0 : index
    %129 = vector.load %arg8[%c0_60, %c0_61] : memref<32x128xf32, #tpu.memory_space<vmem>>, vector<32x128xf32>
    %cst_62 = arith.constant dense<0.000000e+00> : vector<64x128xf32>
    %130 = tpu.matmul %128, %129, %cst_62 {dimension_numbers = #tpu.dot_dimension_numbers<[1], [0], [0], [1], [0, 0, 1, 1], [], []>} : vector<64x32xf32>, vector<32x128xf32>, vector<64x128xf32> -> vector<64x128xf32>
    %c0_63 = arith.constant 0 : index
    %c0_64 = arith.constant 0 : index
    %131 = vector.load %arg9[%c0_63, %c0_64] : memref<1x128xf32, #tpu.memory_space<vmem>>, vector<1x128xf32>
    %132 = vector.broadcast %131 : vector<1x128xf32> to vector<64x128xf32>
    %133 = arith.addf %130, %132 : vector<64x128xf32>
    %c0_65 = arith.constant 0 : index
    %c0_66 = arith.constant 0 : index
    %134 = vector.load %arg10[%c0_65, %c0_66] : memref<64x128xf32, #tpu.memory_space<vmem>>, vector<64x128xf32>
    tpu.vector_store %arg10[%c0_65, %c0_66], %133 {strides = array<i32>} : memref<64x128xf32, #tpu.memory_space<vmem>>, vector<64x128xf32>,
    return
  }
}

</mosaic_0001>

<bundles_post_ra>
// kernel: tpu_custom_call.1
= control target key start
LH: loop header
LB: loop body
LE: loop exit
PB: predicated region body
PF: predicated region fallthrough
CT: control target
= control target key end

     0   :  { %17 = vsyncpa [#allocation5], 0  ;;  %s2507_s0 = inlined_call_operand.vmem [shape: f32[64,32], index: 0, kind: input, shape index: {}]   ;;  %s2508_s1 = inlined_call_operand.vmem [shape: f32[64,128], index: 1, kind: input, shape index: {}]   ;;  %s2509_s2 = inlined_call_operand.hbm [shape: f32[8,128], index: 2, kind: input, shape index: {}]   ;;  %s2510_s3 = inlined_call_operand.vmem [shape: f32[32,128], index: 3, kind: input, shape index: {}]   ;;  %s2511_s4 = inlined_call_operand.vmem [shape: f32[128,128], index: 4, kind: input, shape index: {}]   ;;  %s2512_s5 = inlined_call_operand.vmem [shape: f32[1,128], index: 5, kind: input, shape index: {}]   ;;  %s2513_s6 = inlined_call_operand.vmem [shape: f32[128,32], index: 6, kind: input, shape index: {}]   ;;  %s2514_s7 = inlined_call_operand.vmem [shape: f32[1,32], index: 7, kind: input, shape index: {}]   ;;  %s2515_s8 = inlined_call_operand.vmem [shape: f32[32,128], index: 8, kind: input, shape index: {}]   ;;  %s2516_s9 = inlined_call_operand.vmem [shape: f32[1,128], index: 9, kind: input, shape index: {}]   ;;  %s2517_s10 = inlined_call_operand.hbm [shape: f32[64,128], index: 10, kind: output, shape index: {0}]   ;;  %s2518_s11 = inlined_call_operand.hbm [shape: f32[8,128], index: 11, kind: output, shape index: {1}]  }
   0x1   :  { %18 = vsyncpa [#allocation6], 0 }
   0x2   :  { %19 = vsyncpa [#allocation9], 0  ;;  %s1865_s17 = smov [#allocation4]  }
   0x3   :  { %s30_s18 = sshll.u32 %s1865_s17, 4  ;;  %s31_s18 = int_to_ptr.vmem [resolvable:$true] %s30_s18 }
   0x4   :  { %s1807_s19 = scalar_lea.vmem %s31_s18, 128  ;;  %p1812_p1 = scmp.lt.s32.totalorder %s31_s18, %s31_s18 }
   0x5   :  { %p1808_p0 = scmp.ne.s32.totalorder %s31_s18, %s1807_s19  ;;  %p1813_p2 = scmp.lt.s32.totalorder %s1807_s19, %s1807_s19 }
   0x7   :  { %p1814_p3 = por %p1813_p2, %p1812_p1 }
   0x9   :  { %p1815_p4 = pnand %p1814_p3, %p1808_p0 }
   0xb   :  { %1818 = shalt.err (!%p1815_p4)
}
   0xc   :  { %33 = dma.hbm_to_vmem [thread:$0]  %s2509_s2, 128, %s31_s18, [#allocation5]  }
   0xd   :  { %1859 = dma.done.wait [#allocation5], 128  }
   0xe   :  { %1860 = vsyncadd [#allocation5], 4294967168  ;;  %v1866_v0 = vmov 0.0   ;;  %vm1867_vm0 = vmmov 0   ;;  %v1941_v1 = vld [vmem:[%s2511_s4 + $0x78] sm:$0xff]  ;;  %v1946_v2 = vld [vmem:[%s2511_s4 + $0x70] sm:$0xff] }
   0xf   :  { %1416 = vmatprep.subr.mxu1 %v1866_v0  ;;  %1448 = vmatprep.mubr.msk.f32.mxu1 %vm1867_vm0, %v1866_v0  ;;  %v1953_v3 = vld [vmem:[%s2511_s4 + $0x68] sm:$0xff]  ;;  %v62_v4 = vld [vmem:[%s2510_s3 + $0x18] sm:$0xff]  ;;  %v61_v5 = vld [vmem:[%s2510_s3 + $0x10] sm:$0xff]  ;;  %vm70_vm1 = vcmask 261120  }
  0x10   :  { %1417 = vmatpush3.msra.mxu1 %v1941_v1  ;;  %v1966_v6 = vld [vmem:[%s2511_s4 + $0x60] sm:$0xff]  ;;  %1396 = vmatprep.subr.mxu0 %v62_v4  ;;  %v60_v7 = vld [vmem:[%s2510_s3 + $0x8] sm:$0xff]  ;;  %v1976_v8 = vld [vmem:[%s2511_s4 + $0x58] sm:$0xff] }
  0x11   :  { %1418 = vmatprep.subr.mxu1 %v1866_v0  ;;  %1397 = vmatpush3.msra.mxu0 %v62_v4  ;;  %v59_v9 = vld [vmem:[%s2510_s3] sm:$0xff]  ;;  %v1986_v10 = vld [vmem:[%s2511_s4 + $0x50] sm:$0xff]  ;;  %v1996_v12 = vld [vmem:[%s2511_s4 + $0x48] sm:$0xff] }
  0x12   :  { %1419 = vmatpush3.msra.mxu1 %v1946_v2  ;;  %1398 = vmatprep.subr.mxu0 %v61_v5  ;;  %v51_v11 = vld [vmem:[%s2507_s0] sm:$0xff]  ;;  %v52_v13 = vld [vmem:[%s2507_s0 + $0x8] sm:$0xff]  ;;  %v2015_v15 = vld [vmem:[%s2511_s4 + $0x38] sm:$0xff] }
  0x13   :  { %1420 = vmatprep.subr.mxu1 %v1866_v0  ;;  %1399 = vmatpush3.msra.mxu0 %v61_v5  ;;  %v2006_v14 = vld [vmem:[%s2511_s4 + $0x40] sm:$0xff]  ;;  %v2024_v16 = vld [vmem:[%s2511_s4 + $0x30] sm:$0xff]  ;;  %v2033_v17 = vld [vmem:[%s2511_s4 + $0x28] sm:$0xff] }
  0x14   :  { %1421 = vmatpush3.msra.mxu1 %v1953_v3  ;;  %1400 = vmatprep.subr.mxu0 %v60_v7  ;;  %v2042_v18 = vld [vmem:[%s2511_s4 + $0x20] sm:$0xff]  ;;  %v2051_v19 = vld [vmem:[%s2511_s4 + $0x18] sm:$0xff]  ;;  %v2060_v20 = vld [vmem:[%s2511_s4 + $0x10] sm:$0xff] }
  0x15   :  { %1422 = vmatprep.subr.mxu1 %v1866_v0  ;;  %1401 = vmatpush3.msra.mxu0 %v60_v7  ;;  %v2069_v21 = vld [vmem:[%s2511_s4 + $0x8] sm:$0xff]  ;;  %v2078_v22 = vld [vmem:[%s2511_s4] sm:$0xff]  ;;  %v53_v24 = vld [vmem:[%s2507_s0 + $0x10] sm:$0xff] }
  0x16   :  { %1423 = vmatpush3.msra.mxu1 %v1966_v6  ;;  %1402 = vmatprep.subr.mxu0 %v59_v9  ;;  %v2082_v23 = vld [vmem:[#allocation4] sm:$0xff]  ;;  %v54_v25 = vld [vmem:[%s2507_s0 + $0x18] sm:$0xff]  ;;  %v56_v27 = vld [vmem:[%s2507_s0 + $0x28] sm:$0xff] }
  0x17   :  { %1424 = vmatprep.subr.mxu1 %v1866_v0  ;;  %1403 = vmatpush3.msra.mxu0 %v59_v9  ;;  %v55_v26 = vld [vmem:[%s2507_s0 + $0x20] sm:$0xff]  ;;  %v57_v28 = vld [vmem:[%s2507_s0 + $0x30] sm:$0xff]  ;;  %v58_v29 = vld [vmem:[%s2507_s0 + $0x38] sm:$0xff] }
  0x18   :  { %1425 = vmatpush3.msra.mxu1 %v1976_v8  ;;  %1404 = vmatprep.mubr.msk.f32.mxu0 %vm70_vm1, %v51_v11  ;;  %v2169_v31 = vld [vmem:[%s2512_s5] ss:$0 sm:$0xff]  ;;  %v1195_v53 = vld [vmem:[%s2508_s1 + $0x8] sm:$0xff]  ;;  %v1196_v62 = vld [vmem:[%s2508_s1 + $0x10] sm:$0xff] }
  0x19   :  { %1426 = vmatprep.subr.mxu1 %v1866_v0  ;;  %1405 = vmatmul.mubr.msk.f32.vlgmr.msra.gmra.mxu0 %vm70_vm1, %v52_v13  ;;  %v226_v38 = vld [vmem:[%s2508_s1] sm:$0xff] }
  0x1a   :  { %1427 = vmatpush3.msra.mxu1 %v1986_v10  ;;  %1451 = vmatprep.subr.mxu0 %v1866_v0 }
  0x1b   :  { %1428 = vmatprep.subr.mxu1 %v1866_v0  ;;  %1452 = vmatpush3.msra.mxu0 %v1941_v1 }
  0x1c   :  { %1429 = vmatpush3.msra.mxu1 %v1996_v12  ;;  %1453 = vmatprep.subr.mxu0 %v1866_v0 }
  0x1d   :  { %1430 = vmatprep.subr.mxu1 %v1866_v0  ;;  %1454 = vmatpush3.msra.mxu0 %v1946_v2 }
  0x1e   :  { %1431 = vmatpush3.msra.mxu1 %v2006_v14  ;;  %1455 = vmatprep.subr.mxu0 %v1866_v0 }
  0x1f   :  { %1432 = vmatprep.subr.mxu1 %v1866_v0  ;;  %1456 = vmatpush3.msra.mxu0 %v1953_v3 }
  0x20   :  { %1433 = vmatpush3.msra.mxu1 %v2015_v15  ;;  %1457 = vmatprep.subr.mxu0 %v1866_v0 }
  0x21   :  { %1434 = vmatprep.subr.mxu1 %v1866_v0  ;;  %1458 = vmatpush3.msra.mxu0 %v1966_v6 }
  0x22   :  { %1435 = vmatpush3.msra.mxu1 %v2024_v16  ;;  %1459 = vmatprep.subr.mxu0 %v1866_v0 }
  0x23   :  { %1436 = vmatprep.subr.mxu1 %v1866_v0  ;;  %1460 = vmatpush3.msra.mxu0 %v1976_v8 }
  0x24   :  { %1437 = vmatpush3.msra.mxu1 %v2033_v17  ;;  %1461 = vmatprep.subr.mxu0 %v1866_v0 }
  0x25   :  { %1438 = vmatprep.subr.mxu1 %v1866_v0  ;;  %1462 = vmatpush3.msra.mxu0 %v1986_v10 }
  0x26   :  { %1439 = vmatpush3.msra.mxu1 %v2042_v18  ;;  %1463 = vmatprep.subr.mxu0 %v1866_v0 }
  0x27   :  { %1440 = vmatprep.subr.mxu1 %v1866_v0  ;;  %1464 = vmatpush3.msra.mxu0 %v1996_v12 }
  0x28   :  { %1441 = vmatpush3.msra.mxu1 %v2051_v19  ;;  %1465 = vmatprep.subr.mxu0 %v1866_v0 }
  0x29   :  { %1442 = vmatprep.subr.mxu1 %v1866_v0  ;;  %1466 = vmatpush3.msra.mxu0 %v2006_v14 }
  0x2a   :  { %1443 = vmatpush3.msra.mxu1 %v2060_v20  ;;  %1467 = vmatprep.subr.mxu0 %v1866_v0 }
  0x2b   :  { %1444 = vmatprep.subr.mxu1 %v1866_v0  ;;  %1468 = vmatpush3.msra.mxu0 %v2015_v15 }
  0x2c   :  { %1445 = vmatpush3.msra.mxu1 %v2069_v21  ;;  %1469 = vmatprep.subr.mxu0 %v1866_v0 }
  0x2d   :  { %1446 = vmatprep.subr.mxu1 %v1866_v0  ;;  %1470 = vmatpush3.msra.mxu0 %v2024_v16 }
  0x2e   :  { %1447 = vmatpush3.msra.mxu1 %v2078_v22  ;;  %1471 = vmatprep.subr.mxu0 %v1866_v0 }
  0x2f   :  { %1449 = vmatmul.mubr.f32.vlgmr.msra.gmra.mxu1 %v2082_v23  ;;  %1486 = vmatprep.subr.mxu1 %v1866_v0 }
  0x30   :  { %1487 = vmatpush3.msra.mxu1 %v1941_v1  ;;  %1472 = vmatpush3.msra.mxu0 %v2033_v17 }
  0x31   :  { %1488 = vmatprep.subr.mxu1 %v1866_v0  ;;  %1473 = vmatprep.subr.mxu0 %v1866_v0 }
  0x32   :  { %1489 = vmatpush3.msra.mxu1 %v1946_v2  ;;  %1474 = vmatpush3.msra.mxu0 %v2042_v18 }
  0x33   :  { %1490 = vmatprep.subr.mxu1 %v1866_v0  ;;  %1475 = vmatprep.subr.mxu0 %v1866_v0 }
  0x34   :  { %1491 = vmatpush3.msra.mxu1 %v1953_v3  ;;  %1476 = vmatpush3.msra.mxu0 %v2051_v19 }
  0x35   :  { %1492 = vmatprep.subr.mxu1 %v1866_v0  ;;  %1477 = vmatprep.subr.mxu0 %v1866_v0 }
  0x36   :  { %1493 = vmatpush3.msra.mxu1 %v1966_v6  ;;  %1478 = vmatpush3.msra.mxu0 %v2060_v20 }
  0x37   :  { %1494 = vmatprep.subr.mxu1 %v1866_v0  ;;  %1479 = vmatprep.subr.mxu0 %v1866_v0 }
  0x38   :  { %1495 = vmatpush3.msra.mxu1 %v1976_v8  ;;  %1480 = vmatpush3.msra.mxu0 %v2069_v21 }
  0x39   :  { %1496 = vmatprep.subr.mxu1 %v1866_v0  ;;  %1481 = vmatprep.subr.mxu0 %v1866_v0 }
  0x3a   :  { %1497 = vmatpush3.msra.mxu1 %v1986_v10  ;;  %1482 = vmatpush3.msra.mxu0 %v2078_v22 }
  0x3b   :  { %1498 = vmatprep.subr.mxu1 %v1866_v0  ;;  %1518 = vmatprep.mubr.msk.f32.mxu1 %vm1867_vm0, %v1866_v0 }
  0x3c   :  { %1499 = vmatpush3.msra.mxu1 %v1996_v12  ;;  %1521 = vmatprep.subr.mxu0 %v1866_v0 }
  0x3d   :  { %1500 = vmatprep.subr.mxu1 %v1866_v0  ;;  %1407 = vmatprep.mubr.msk.f32.mxu0 %vm70_vm1, %v53_v24  ;;  %v1197_v24 = vld [vmem:[%s2508_s1 + $0x18] sm:$0xff] }
  0x3e   :  { %1501 = vmatpush3.msra.mxu1 %v2006_v14  ;;  %1408 = vmatmul.mubr.msk.f32.gmra.mxu0 %vm70_vm1, %v54_v25 }
  0x3f   :  { %1502 = vmatprep.subr.mxu1 %v1866_v0  ;;  %1410 = vmatprep.mubr.msk.f32.mxu0 %vm70_vm1, %v55_v26 }
  0x40   :  { %1503 = vmatpush3.msra.mxu1 %v2015_v15 }
  0x41   :  { %1504 = vmatprep.subr.mxu1 %v1866_v0 }
  0x42   :  { %1505 = vmatpush3.msra.mxu1 %v2024_v16  ;;  %1411 = vmatmul.mubr.msk.f32.gmra.mxu0 %vm70_vm1, %v56_v27 }
  0x43   :  { %1506 = vmatprep.subr.mxu1 %v1866_v0  ;;  %1413 = vmatprep.mubr.msk.f32.mxu0 %vm70_vm1, %v57_v28 }
  0x44   :  { %1507 = vmatpush3.msra.mxu1 %v2033_v17 }
  0x45   :  { %1508 = vmatprep.subr.mxu1 %v1866_v0 }
  0x46   :  { %1509 = vmatpush3.msra.mxu1 %v2042_v18  ;;  %1414 = vmatmul.mubr.msk.f32.gmra.mxu0 %vm70_vm1, %v58_v29 }
  0x47   :  { %1510 = vmatprep.subr.mxu1 %v1866_v0  ;;  %1483 = vmatprep.mubr.msk.f32.mxu0 %vm1867_vm0, %v1866_v0 }
  0x48   :  { %1511 = vmatpush3.msra.mxu1 %v2051_v19 }
  0x49   :  { %1512 = vmatprep.subr.mxu1 %v1866_v0 }
  0x4a   :  { %1513 = vmatpush3.msra.mxu1 %v2060_v20 }
  0x4b   :  { %1514 = vmatprep.subr.mxu1 %v1866_v0 }
  0x4c   :  { %1515 = vmatpush3.msra.mxu1 %v2069_v21 }
  0x4d   :  { %1516 = vmatprep.subr.mxu1 %v1866_v0 }
  0x4e   :  { %1517 = vmatpush3.msra.mxu1 %v2078_v22 }
  0x4f   :  { %1556 = vmatprep.subr.mxu1 %v1866_v0 }
  0xd9   :  { %v1406_v30 = vpop.f32.mrf.mxu0 }
  0xda   :  { %v167_v48 = vadd.f32 %v1406_v30, %v2169_v31 }
  0xdb   :  { %v161_v32 = vpop.f32.mrf.mxu0 }
  0xdc   :  { %v162_v33 = vadd.f32 %v2169_v31, %v161_v32 }
  0xef   :  { %v293_v34 = vpop.f32.mrf.mxu1 }
  0xf0   :  { %v294_v35 = vadd.f32 %v293_v34, %v162_v33  ;;  %v1198_v34 = vld [vmem:[%s2508_s1 + $0x20] sm:$0xff] }
  0xf1   :  { %v1450_v36 = vpop.f32.mrf.mxu1 }
  0xf2   :  { %1767 = vtanh.f32 %v294_v35 }
  0xfe   :  { %v2213_v42 = vpop.f32.mrf.mxu0 }
  0xff   :  { %v1768_v37 = vpop.eup %1767  ;;  %v177_v7 = vadd.f32 %v2213_v42, %v2169_v31  ;;  %v874_v42 = vld [vmem:[%s2513_s6 + $0x18] sm:$0xff] }
 0x100   :  { %v298_v39 = vsub.f32 %v2082_v23, %v1768_v37  ;;  %v171_v43 = vpop.f32.mrf.mxu0 }
 0x101   :  { %v172_v57 = vadd.f32 %v2169_v31, %v171_v43  ;;  %v873_v43 = vld [vmem:[%s2513_s6 + $0x10] sm:$0xff] }
 0x102   :  { %v299_v40 = vmul.f32 %v298_v39, %v226_v38  ;;  %v2215_v44 = vpop.f32.mrf.mxu0  ;;  %v878_v38 = vld [vmem:[%s2513_s6 + $0x38] sm:$0xff]  ;;  %v877_v39 = vld [vmem:[%s2513_s6 + $0x30] sm:$0xff] }
 0x104   :  { %v2176_v41 = vadd.f32 %v1768_v37, %v299_v40  ;;  %v2217_v45 = vpop.f32.mrf.mxu0  ;;  %v876_v40 = vld [vmem:[%s2513_s6 + $0x28] sm:$0xff] }
 0x105   :  { %v182_v28 = vadd.f32 %v2169_v31, %v2217_v45  ;;  %v871_v45 = vld [vmem:[%s2513_s6] sm:$0xff] }
 0x106   :  { %1484 = vmatmul.mubr.f32.vlgmr.msra.gmra.mxu0 %v2176_v41  ;;  %v2219_v46 = vpop.f32.mrf.mxu0 }
 0x107   :  { %1522 = vmatpush3.msra.mxu0 %v1941_v1  ;;  %1553 = vmatprep.mubr.msk.f32.mxu0 %vm1867_vm0, %v1866_v0 }
 0x108   :  { %1523 = vmatprep.subr.mxu0 %v1866_v0  ;;  %v2221_v47 = vpop.f32.mrf.mxu0 }
 0x109   :  { %1524 = vmatpush3.msra.mxu0 %v1946_v2 }
 0x10a   :  { %1525 = vmatprep.subr.mxu0 %v1866_v0 }
 0x10b   :  { %1526 = vmatpush3.msra.mxu0 %v1953_v3 }
 0x10c   :  { %1527 = vmatprep.subr.mxu0 %v1866_v0 }
 0x10d   :  { %1528 = vmatpush3.msra.mxu0 %v1966_v6 }
 0x10e   :  { %1529 = vmatprep.subr.mxu0 %v1866_v0 }
 0x10f   :  { %1530 = vmatpush3.msra.mxu0 %v1976_v8 }
 0x110   :  { %1531 = vmatprep.subr.mxu0 %v1866_v0 }
 0x111   :  { %1532 = vmatpush3.msra.mxu0 %v1986_v10 }
 0x112   :  { %1533 = vmatprep.subr.mxu0 %v1866_v0 }
 0x113   :  { %1534 = vmatpush3.msra.mxu0 %v1996_v12 }
 0x114   :  { %1535 = vmatprep.subr.mxu0 %v1866_v0 }
 0x115   :  { %1536 = vmatpush3.msra.mxu0 %v2006_v14 }
 0x116   :  { %1537 = vmatprep.subr.mxu0 %v1866_v0 }
 0x117   :  { %1538 = vmatpush3.msra.mxu0 %v2015_v15 }
 0x118   :  { %1539 = vmatprep.subr.mxu0 %v1866_v0 }
 0x119   :  { %1540 = vmatpush3.msra.mxu0 %v2024_v16 }
 0x11a   :  { %1541 = vmatprep.subr.mxu0 %v1866_v0 }
 0x11b   :  { %1542 = vmatpush3.msra.mxu0 %v2033_v17 }
 0x11c   :  { %1543 = vmatprep.subr.mxu0 %v1866_v0 }
 0x11d   :  { %1544 = vmatpush3.msra.mxu0 %v2042_v18 }
 0x11e   :  { %1545 = vmatprep.subr.mxu0 %v1866_v0 }
 0x11f   :  { %1546 = vmatpush3.msra.mxu0 %v2051_v19 }
 0x120   :  { %1547 = vmatprep.subr.mxu0 %v1866_v0 }
 0x121   :  { %1548 = vmatpush3.msra.mxu0 %v2060_v20 }
 0x122   :  { %1549 = vmatprep.subr.mxu0 %v1866_v0 }
 0x123   :  { %1550 = vmatpush3.msra.mxu0 %v2069_v21 }
 0x124   :  { %1551 = vmatprep.subr.mxu0 %v1866_v0 }
 0x125   :  { %1552 = vmatpush3.msra.mxu0 %v2078_v22 }
 0x126   :  { %1591 = vmatprep.subr.mxu0 %v1866_v0 }
 0x1c6   :  { %v372_v49 = vpop.f32.mrf.mxu0 }
 0x1c7   :  { %v373_v50 = vadd.f32 %v372_v49, %v167_v48  ;;  %v1010_v48 = vld [vmem:[%s2515_s8 + $0x18] sm:$0xff]  ;;  %v192_v49 = vadd.f32 %v2169_v31, %v2221_v47  ;;  %v1008_v47 = vld [vmem:[%s2515_s8 + $0x8] sm:$0xff] }
 0x1c8   :  { %v1485_v51 = vpop.f32.mrf.mxu0 }
 0x1c9   :  { %1769 = vtanh.f32 %v373_v50 }
 0x1d6   :  { %v1770_v52 = vpop.eup %1769 }
 0x1d7   :  { %v377_v54 = vsub.f32 %v2176_v41, %v1770_v52 }
 0x1d9   :  { %v378_v55 = vmul.f32 %v1195_v53, %v377_v54  ;;  %v1200_v54 = vld [vmem:[%s2508_s1 + $0x30] sm:$0xff] }
 0x1db   :  { %v2228_v56 = vadd.f32 %v1770_v52, %v378_v55 }
 0x1dd   :  { %1519 = vmatmul.mubr.f32.vlgmr.msra.gmra.mxu1 %v2228_v56 }
 0x1de   :  { %1557 = vmatpush3.msra.mxu1 %v1941_v1  ;;  %1588 = vmatprep.mubr.msk.f32.mxu1 %vm1867_vm0, %v1866_v0 }
 0x1df   :  { %1558 = vmatprep.subr.mxu1 %v1866_v0 }
 0x1e0   :  { %1559 = vmatpush3.msra.mxu1 %v1946_v2 }
 0x1e1   :  { %1560 = vmatprep.subr.mxu1 %v1866_v0 }
 0x1e2   :  { %1561 = vmatpush3.msra.mxu1 %v1953_v3 }
 0x1e3   :  { %1562 = vmatprep.subr.mxu1 %v1866_v0 }
 0x1e4   :  { %1563 = vmatpush3.msra.mxu1 %v1966_v6 }
 0x1e5   :  { %1564 = vmatprep.subr.mxu1 %v1866_v0 }
 0x1e6   :  { %1565 = vmatpush3.msra.mxu1 %v1976_v8 }
 0x1e7   :  { %1566 = vmatprep.subr.mxu1 %v1866_v0 }
 0x1e8   :  { %1567 = vmatpush3.msra.mxu1 %v1986_v10 }
 0x1e9   :  { %1568 = vmatprep.subr.mxu1 %v1866_v0 }
 0x1ea   :  { %1569 = vmatpush3.msra.mxu1 %v1996_v12 }
 0x1eb   :  { %1570 = vmatprep.subr.mxu1 %v1866_v0 }
 0x1ec   :  { %1571 = vmatpush3.msra.mxu1 %v2006_v14 }
 0x1ed   :  { %1572 = vmatprep.subr.mxu1 %v1866_v0 }
 0x1ee   :  { %1573 = vmatpush3.msra.mxu1 %v2015_v15 }
 0x1ef   :  { %1574 = vmatprep.subr.mxu1 %v1866_v0 }
 0x1f0   :  { %1575 = vmatpush3.msra.mxu1 %v2024_v16 }
 0x1f1   :  { %1576 = vmatprep.subr.mxu1 %v1866_v0 }
 0x1f2   :  { %1577 = vmatpush3.msra.mxu1 %v2033_v17 }
 0x1f3   :  { %1578 = vmatprep.subr.mxu1 %v1866_v0 }
 0x1f4   :  { %1579 = vmatpush3.msra.mxu1 %v2042_v18 }
 0x1f5   :  { %1580 = vmatprep.subr.mxu1 %v1866_v0 }
 0x1f6   :  { %1581 = vmatpush3.msra.mxu1 %v2051_v19 }
 0x1f7   :  { %1582 = vmatprep.subr.mxu1 %v1866_v0 }
 0x1f8   :  { %1583 = vmatpush3.msra.mxu1 %v2060_v20 }
 0x1f9   :  { %1584 = vmatprep.subr.mxu1 %v1866_v0 }
 0x1fa   :  { %1585 = vmatpush3.msra.mxu1 %v2069_v21 }
 0x1fb   :  { %1586 = vmatprep.subr.mxu1 %v1866_v0 }
 0x1fc   :  { %1587 = vmatpush3.msra.mxu1 %v2078_v22 }
 0x1fd   :  { %1626 = vmatprep.subr.mxu1 %v1866_v0 }
 0x29d   :  { %v452_v58 = vpop.f32.mrf.mxu1 }
 0x29e   :  { %v453_v59 = vadd.f32 %v452_v58, %v172_v57  ;;  %v1009_v58 = vld [vmem:[%s2515_s8 + $0x10] sm:$0xff] }
 0x29f   :  { %v1520_v60 = vpop.f32.mrf.mxu1 }
 0x2a0   :  { %1771 = vtanh.f32 %v453_v59  ;;  %v1007_v59 = vld [vmem:[%s2515_s8] sm:$0xff] }
 0x2a1   :  { %v2475_v60 = vld [vmem:[%s2514_s7] ss:$0 sm:$0xff] }
 0x2ad   :  { %v1772_v61 = vpop.eup %1771 }
 0x2ae   :  { %v457_v63 = vsub.f32 %v2228_v56, %v1772_v61 }
 0x2b0   :  { %v458_v4 = vmul.f32 %v1196_v62, %v457_v63 }
 0x2b2   :  { %v2270_v5 = vadd.f32 %v1772_v61, %v458_v4 }
 0x2b4   :  { %1554 = vmatmul.mubr.f32.vlgmr.msra.gmra.mxu0 %v2270_v5 }
 0x2b5   :  { %1592 = vmatpush3.msra.mxu0 %v1941_v1  ;;  %1623 = vmatprep.mubr.msk.f32.mxu0 %vm1867_vm0, %v1866_v0 }
 0x2b6   :  { %1593 = vmatprep.subr.mxu0 %v1866_v0 }
 0x2b7   :  { %1594 = vmatpush3.msra.mxu0 %v1946_v2 }
 0x2b8   :  { %1595 = vmatprep.subr.mxu0 %v1866_v0 }
 0x2b9   :  { %1596 = vmatpush3.msra.mxu0 %v1953_v3 }
 0x2ba   :  { %1597 = vmatprep.subr.mxu0 %v1866_v0 }
 0x2bb   :  { %1598 = vmatpush3.msra.mxu0 %v1966_v6 }
 0x2bc   :  { %1599 = vmatprep.subr.mxu0 %v1866_v0 }
 0x2bd   :  { %1600 = vmatpush3.msra.mxu0 %v1976_v8 }
 0x2be   :  { %1601 = vmatprep.subr.mxu0 %v1866_v0 }
 0x2bf   :  { %1602 = vmatpush3.msra.mxu0 %v1986_v10 }
 0x2c0   :  { %1603 = vmatprep.subr.mxu0 %v1866_v0 }
 0x2c1   :  { %1604 = vmatpush3.msra.mxu0 %v1996_v12 }
 0x2c2   :  { %1605 = vmatprep.subr.mxu0 %v1866_v0 }
 0x2c3   :  { %1606 = vmatpush3.msra.mxu0 %v2006_v14 }
 0x2c4   :  { %1607 = vmatprep.subr.mxu0 %v1866_v0 }
 0x2c5   :  { %1608 = vmatpush3.msra.mxu0 %v2015_v15 }
 0x2c6   :  { %1609 = vmatprep.subr.mxu0 %v1866_v0 }
 0x2c7   :  { %1610 = vmatpush3.msra.mxu0 %v2024_v16 }
 0x2c8   :  { %1611 = vmatprep.subr.mxu0 %v1866_v0 }
 0x2c9   :  { %1612 = vmatpush3.msra.mxu0 %v2033_v17 }
 0x2ca   :  { %1613 = vmatprep.subr.mxu0 %v1866_v0 }
 0x2cb   :  { %1614 = vmatpush3.msra.mxu0 %v2042_v18 }
 0x2cc   :  { %1615 = vmatprep.subr.mxu0 %v1866_v0 }
 0x2cd   :  { %1616 = vmatpush3.msra.mxu0 %v2051_v19 }
 0x2ce   :  { %1617 = vmatprep.subr.mxu0 %v1866_v0 }
 0x2cf   :  { %1618 = vmatpush3.msra.mxu0 %v2060_v20 }
 0x2d0   :  { %1619 = vmatprep.subr.mxu0 %v1866_v0 }
 0x2d1   :  { %1620 = vmatpush3.msra.mxu0 %v2069_v21 }
 0x2d2   :  { %1621 = vmatprep.subr.mxu0 %v1866_v0 }
 0x2d3   :  { %1622 = vmatpush3.msra.mxu0 %v2078_v22 }
 0x2d4   :  { %1661 = vmatprep.subr.mxu0 %v1866_v0 }
 0x374   :  { %v532_v9 = vpop.f32.mrf.mxu0 }
 0x375   :  { %v533_v11 = vadd.f32 %v532_v9, %v177_v7 }
 0x376   :  { %v1555_v13 = vpop.f32.mrf.mxu0 }
 0x377   :  { %1773 = vtanh.f32 %v533_v11 }
 0x384   :  { %v1774_v23 = vpop.eup %1773 }
 0x385   :  { %v537_v25 = vsub.f32 %v2270_v5, %v1774_v23 }
 0x387   :  { %v538_v26 = vmul.f32 %v1197_v24, %v537_v25 }
 0x389   :  { %v2313_v27 = vadd.f32 %v1774_v23, %v538_v26 }
 0x38b   :  { %1589 = vmatmul.mubr.f32.vlgmr.msra.gmra.mxu1 %v2313_v27 }
 0x38c   :  { %1627 = vmatpush3.msra.mxu1 %v1941_v1  ;;  %1658 = vmatprep.mubr.msk.f32.mxu1 %vm1867_vm0, %v1866_v0 }
 0x38d   :  { %1628 = vmatprep.subr.mxu1 %v1866_v0 }
 0x38e   :  { %1629 = vmatpush3.msra.mxu1 %v1946_v2 }
 0x38f   :  { %1630 = vmatprep.subr.mxu1 %v1866_v0 }
 0x390   :  { %1631 = vmatpush3.msra.mxu1 %v1953_v3 }
 0x391   :  { %1632 = vmatprep.subr.mxu1 %v1866_v0 }
 0x392   :  { %1633 = vmatpush3.msra.mxu1 %v1966_v6 }
 0x393   :  { %1634 = vmatprep.subr.mxu1 %v1866_v0 }
 0x394   :  { %1635 = vmatpush3.msra.mxu1 %v1976_v8 }
 0x395   :  { %1636 = vmatprep.subr.mxu1 %v1866_v0 }
 0x396   :  { %1637 = vmatpush3.msra.mxu1 %v1986_v10 }
 0x397   :  { %1638 = vmatprep.subr.mxu1 %v1866_v0 }
 0x398   :  { %1639 = vmatpush3.msra.mxu1 %v1996_v12 }
 0x399   :  { %1640 = vmatprep.subr.mxu1 %v1866_v0 }
 0x39a   :  { %1641 = vmatpush3.msra.mxu1 %v2006_v14 }
 0x39b   :  { %1642 = vmatprep.subr.mxu1 %v1866_v0 }
 0x39c   :  { %1643 = vmatpush3.msra.mxu1 %v2015_v15 }
 0x39d   :  { %1644 = vmatprep.subr.mxu1 %v1866_v0 }
 0x39e   :  { %1645 = vmatpush3.msra.mxu1 %v2024_v16 }
 0x39f   :  { %1646 = vmatprep.subr.mxu1 %v1866_v0 }
 0x3a0   :  { %1647 = vmatpush3.msra.mxu1 %v2033_v17 }
 0x3a1   :  { %1648 = vmatprep.subr.mxu1 %v1866_v0 }
 0x3a2   :  { %1649 = vmatpush3.msra.mxu1 %v2042_v18 }
 0x3a3   :  { %1650 = vmatprep.subr.mxu1 %v1866_v0 }
 0x3a4   :  { %1651 = vmatpush3.msra.mxu1 %v2051_v19 }
 0x3a5   :  { %1652 = vmatprep.subr.mxu1 %v1866_v0 }
 0x3a6   :  { %1653 = vmatpush3.msra.mxu1 %v2060_v20 }
 0x3a7   :  { %1654 = vmatprep.subr.mxu1 %v1866_v0 }
 0x3a8   :  { %1655 = vmatpush3.msra.mxu1 %v2069_v21 }
 0x3a9   :  { %1656 = vmatprep.subr.mxu1 %v1866_v0 }
 0x3aa   :  { %1657 = vmatpush3.msra.mxu1 %v2078_v22 }
 0x44b   :  { %v612_v29 = vpop.f32.mrf.mxu1 }
 0x44c   :  { %v613_v30 = vadd.f32 %v612_v29, %v182_v28 }
 0x44d   :  { %v1590_v32 = vpop.f32.mrf.mxu1 }
 0x44e   :  { %1775 = vtanh.f32 %v613_v30 }
 0x45b   :  { %v1776_v33 = vpop.eup %1775 }
 0x45c   :  { %v617_v35 = vsub.f32 %v2313_v27, %v1776_v33 }
 0x45e   :  { %v618_v36 = vmul.f32 %v1198_v34, %v617_v35 }
 0x460   :  { %v2355_v37 = vadd.f32 %v1776_v33, %v618_v36  ;;  %v197_v33 = vadd.f32 %v2219_v46, %v2169_v31 }
 0x462   :  { %1624 = vmatmul.mubr.f32.vlgmr.msra.gmra.mxu0 %v2355_v37 }
 0x463   :  { %1662 = vmatpush3.msra.mxu0 %v1941_v1  ;;  %1693 = vmatprep.mubr.msk.f32.mxu0 %vm1867_vm0, %v1866_v0  ;;  %v886_v1 = vld [vmem:[%s2513_s6 + $0x78] sm:$0xff] }
 0x464   :  { %1663 = vmatprep.subr.mxu0 %v1866_v0  ;;  %1696 = vmatprep.subr.mxu1 %v886_v1 }
 0x465   :  { %1664 = vmatpush3.msra.mxu0 %v1946_v2  ;;  %v187_v2 = vadd.f32 %v2215_v44, %v2169_v31  ;;  %v872_v44 = vld [vmem:[%s2513_s6 + $0x8] sm:$0xff] }
 0x466   :  { %1665 = vmatprep.subr.mxu0 %v1866_v0 }
 0x467   :  { %1666 = vmatpush3.msra.mxu0 %v1953_v3 }
 0x468   :  { %1667 = vmatprep.subr.mxu0 %v1866_v0 }
 0x469   :  { %1668 = vmatpush3.msra.mxu0 %v1966_v6 }
 0x46a   :  { %1669 = vmatprep.subr.mxu0 %v1866_v0 }
 0x46b   :  { %1670 = vmatpush3.msra.mxu0 %v1976_v8 }
 0x46c   :  { %1671 = vmatprep.subr.mxu0 %v1866_v0 }
 0x46d   :  { %1672 = vmatpush3.msra.mxu0 %v1986_v10 }
 0x46e   :  { %1673 = vmatprep.subr.mxu0 %v1866_v0 }
 0x46f   :  { %1674 = vmatpush3.msra.mxu0 %v1996_v12  ;;  %v1199_v12 = vld [vmem:[%s2508_s1 + $0x28] sm:$0xff] }
 0x470   :  { %1675 = vmatprep.subr.mxu0 %v1866_v0 }
 0x471   :  { %1676 = vmatpush3.msra.mxu0 %v2006_v14 }
 0x472   :  { %1677 = vmatprep.subr.mxu0 %v1866_v0 }
 0x473   :  { %1678 = vmatpush3.msra.mxu0 %v2015_v15 }
 0x474   :  { %1679 = vmatprep.subr.mxu0 %v1866_v0 }
 0x475   :  { %1680 = vmatpush3.msra.mxu0 %v2024_v16  ;;  %v885_v16 = vld [vmem:[%s2513_s6 + $0x70] sm:$0xff] }
 0x476   :  { %1681 = vmatprep.subr.mxu0 %v1866_v0 }
 0x477   :  { %1682 = vmatpush3.msra.mxu0 %v2033_v17  ;;  %v884_v17 = vld [vmem:[%s2513_s6 + $0x68] sm:$0xff] }
 0x478   :  { %1683 = vmatprep.subr.mxu0 %v1866_v0 }
 0x479   :  { %1684 = vmatpush3.msra.mxu0 %v2042_v18  ;;  %v883_v18 = vld [vmem:[%s2513_s6 + $0x60] sm:$0xff] }
 0x47a   :  { %1685 = vmatprep.subr.mxu0 %v1866_v0 }
 0x47b   :  { %1686 = vmatpush3.msra.mxu0 %v2051_v19  ;;  %v882_v19 = vld [vmem:[%s2513_s6 + $0x58] sm:$0xff] }
 0x47c   :  { %1687 = vmatprep.subr.mxu0 %v1866_v0 }
 0x47d   :  { %1688 = vmatpush3.msra.mxu0 %v2060_v20  ;;  %v881_v20 = vld [vmem:[%s2513_s6 + $0x50] sm:$0xff] }
 0x47e   :  { %1689 = vmatprep.subr.mxu0 %v1866_v0 }
 0x47f   :  { %1690 = vmatpush3.msra.mxu0 %v2069_v21  ;;  %v880_v21 = vld [vmem:[%s2513_s6 + $0x48] sm:$0xff] }
 0x480   :  { %1691 = vmatprep.subr.mxu0 %v1866_v0 }
 0x481   :  { %1692 = vmatpush3.msra.mxu0 %v2078_v22  ;;  %v879_v22 = vld [vmem:[%s2513_s6 + $0x40] sm:$0xff] }
 0x482   :  { %1740 = vmatprep.subr.mxu0 %v1010_v48 }
 0x522   :  { %v692_v3 = vpop.f32.mrf.mxu0 }
 0x523   :  { %v693_v6 = vadd.f32 %v692_v3, %v187_v2 }
 0x524   :  { %v1625_v8 = vpop.f32.mrf.mxu0 }
 0x525   :  { %1777 = vtanh.f32 %v693_v6  ;;  %v1203_v8 = vld [vmem:[%s2516_s9] ss:$0 sm:$0xff] }
 0x532   :  { %v1778_v10 = vpop.eup %1777 }
 0x533   :  { %v697_v0 = vsub.f32 %v2355_v37, %v1778_v10 }
 0x535   :  { %v698_v14 = vmul.f32 %v1199_v12, %v697_v0 }
 0x537   :  { %v2400_v15 = vadd.f32 %v1778_v10, %v698_v14 }
 0x539   :  { %1659 = vmatmul.mubr.f32.vlgmr.msra.gmra.mxu1 %v2400_v15 }
 0x53a   :  { %1697 = vmatpush3.msra.mxu1 %v886_v1  ;;  %1728 = vmatprep.mubr.f32.mxu1 %v2176_v41  ;;  %v875_v41 = vld [vmem:[%s2513_s6 + $0x20] sm:$0xff]  ;;  %v1201_v1 = vld [vmem:[%s2508_s1 + $0x38] sm:$0xff]  ;;  %s1868_s1 = smov [#allocation8]  }
 0x53b   :  { %1698 = vmatprep.subr.mxu1 %v885_v16  ;;  %s1173_s9 = sshll.u32 %s1868_s1, 4  ;;  %s1174_s9 = int_to_ptr.vmem [resolvable:$true] %s1173_s9 }
 0x53c   :  { %1699 = vmatpush3.msra.mxu1 %v885_v16  ;;  %s1819_s24 = scalar_lea.vmem %s1174_s9, 128  ;;  %p1824_p6 = scmp.lt.s32.totalorder %s1174_s9, %s1174_s9 }
 0x53d   :  { %1700 = vmatprep.subr.mxu1 %v884_v17  ;;  %p1820_p5 = scmp.ne.s32.totalorder %s1174_s9, %s1819_s24  ;;  %p1825_p7 = scmp.lt.s32.totalorder %s1819_s24, %s1819_s24 }
 0x53e   :  { %1701 = vmatpush3.msra.mxu1 %v884_v17 }
 0x53f   :  { %1702 = vmatprep.subr.mxu1 %v883_v18  ;;  %p1826_p8 = por %p1825_p7, %p1824_p6 }
 0x540   :  { %1703 = vmatpush3.msra.mxu1 %v883_v18 }
 0x541   :  { %1704 = vmatprep.subr.mxu1 %v882_v19  ;;  %p1827_p9 = pnand %p1826_p8, %p1820_p5 }
 0x542   :  { %1705 = vmatpush3.msra.mxu1 %v882_v19 }
 0x543   :  { %1706 = vmatprep.subr.mxu1 %v881_v20 }
 0x544   :  { %1707 = vmatpush3.msra.mxu1 %v881_v20 }
 0x545   :  { %1708 = vmatprep.subr.mxu1 %v880_v21 }
 0x546   :  { %1709 = vmatpush3.msra.mxu1 %v880_v21 }
 0x547   :  { %1710 = vmatprep.subr.mxu1 %v879_v22 }
 0x548   :  { %1711 = vmatpush3.msra.mxu1 %v879_v22 }
 0x549   :  { %1712 = vmatprep.subr.mxu1 %v878_v38 }
 0x54a   :  { %1713 = vmatpush3.msra.mxu1 %v878_v38 }
 0x54b   :  { %1714 = vmatprep.subr.mxu1 %v877_v39 }
 0x54c   :  { %1715 = vmatpush3.msra.mxu1 %v877_v39 }
 0x54d   :  { %1716 = vmatprep.subr.mxu1 %v876_v40 }
 0x54e   :  { %1717 = vmatpush3.msra.mxu1 %v876_v40 }
 0x54f   :  { %1718 = vmatprep.subr.mxu1 %v875_v41 }
 0x550   :  { %1719 = vmatpush3.msra.mxu1 %v875_v41 }
 0x551   :  { %1720 = vmatprep.subr.mxu1 %v874_v42 }
 0x552   :  { %1721 = vmatpush3.msra.mxu1 %v874_v42 }
 0x553   :  { %1722 = vmatprep.subr.mxu1 %v873_v43 }
 0x554   :  { %1723 = vmatpush3.msra.mxu1 %v873_v43 }
 0x555   :  { %1724 = vmatprep.subr.mxu1 %v872_v44 }
 0x556   :  { %1725 = vmatpush3.msra.mxu1 %v872_v44 }
 0x557   :  { %1726 = vmatprep.subr.mxu1 %v871_v45 }
 0x558   :  { %1727 = vmatpush3.msra.mxu1 %v871_v45 }
 0x559   :  { %1729 = vmatmul.mubr.f32.vlgmr.msra.gmra.mxu1 %v2228_v56 }
 0x55a   :  { %1731 = vmatprep.mubr.f32.mxu1 %v2270_v5 }
 0x55d   :  { %1732 = vmatmul.mubr.f32.gmra.mxu1 %v2313_v27 }
 0x55e   :  { %1734 = vmatprep.mubr.f32.mxu1 %v2355_v37 }
 0x561   :  { %1735 = vmatmul.mubr.f32.gmra.mxu1 %v2400_v15 }
 0x5f9   :  { %v772_v50 = vpop.f32.mrf.mxu1 }
 0x5fa   :  { %v773_v51 = vadd.f32 %v772_v50, %v192_v49 }
 0x5fb   :  { %v1660_v52 = vpop.f32.mrf.mxu1 }
 0x5fc   :  { %1779 = vtanh.f32 %v773_v51 }
 0x609   :  { %v1780_v53 = vpop.eup %1779 }
 0x60a   :  { %v777_v55 = vsub.f32 %v2400_v15, %v1780_v53 }
 0x60c   :  { %v778_v56 = vmul.f32 %v1200_v54, %v777_v55 }
 0x60e   :  { %v779_v57 = vadd.f32 %v1780_v53, %v778_v56 }
 0x610   :  { %1694 = vmatmul.mubr.f32.vlgmr.msra.gmra.mxu0 %v779_v57  ;;  %1737 = vmatprep.mubr.f32.mxu1 %v779_v57 }
 0x611   :  { %1741 = vmatpush3.msra.mxu0 %v1010_v48 }
 0x612   :  { %1742 = vmatprep.subr.mxu0 %v1009_v58 }
 0x613   :  { %1743 = vmatpush3.msra.mxu0 %v1009_v58 }
 0x614   :  { %1744 = vmatprep.subr.mxu0 %v1008_v47 }
 0x615   :  { %1745 = vmatpush3.msra.mxu0 %v1008_v47 }
 0x616   :  { %1746 = vmatprep.subr.mxu0 %v1007_v59 }
 0x617   :  { %1747 = vmatpush3.msra.mxu0 %v1007_v59 }
 0x619   :  { %v1730_v61 = vpop.f32.mrf.mxu1 }
 0x61a   :  { %v966_v62 = vadd.f32 %v1730_v61, %v2475_v60 }
 0x61b   :  { %v960_v63 = vpop.f32.mrf.mxu1 }
 0x61c   :  { %v961_v4 = vadd.f32 %v2475_v60, %v960_v63 }
 0x61d   :  { %v1733_v5 = vpop.f32.mrf.mxu1 }
 0x61e   :  { %1781 = vtanh.f32 %v961_v4  ;;  %v976_v7 = vadd.f32 %v1733_v5, %v2475_v60 }
 0x61f   :  { %1783 = vtanh.f32 %v966_v62  ;;  %v970_v9 = vpop.f32.mrf.mxu1 }
 0x620   :  { %v971_v11 = vadd.f32 %v2475_v60, %v970_v9 }
 0x621   :  { %v1736_v13 = vpop.f32.mrf.mxu1 }
 0x622   :  { %1785 = vtanh.f32 %v971_v11  ;;  %v986_v23 = vadd.f32 %v1736_v13, %v2475_v60 }
 0x623   :  { %1787 = vtanh.f32 %v976_v7  ;;  %v980_v24 = vpop.f32.mrf.mxu1 }
 0x624   :  { %v981_v25 = vadd.f32 %v2475_v60, %v980_v24 }
 0x626   :  { %1789 = vtanh.f32 %v981_v25 }
 0x627   :  { %1791 = vtanh.f32 %v986_v23 }
 0x62b   :  { %v1782_v26 = vpop.eup %1781 }
 0x62c   :  { %v1784_v27 = vpop.eup %1783  ;;  %1748 = vmatprep.mubr.msk.f32.mxu0 %vm70_vm1, %v1782_v26 }
 0x62d   :  { %1749 = vmatmul.mubr.msk.f32.vlgmr.msra.gmra.mxu0 %vm70_vm1, %v1784_v27 }
 0x62f   :  { %v1786_v28 = vpop.eup %1785 }
 0x630   :  { %v1788_v29 = vpop.eup %1787  ;;  %1751 = vmatprep.mubr.msk.f32.mxu0 %vm70_vm1, %v1786_v28 }
 0x631   :  { %1752 = vmatmul.mubr.msk.f32.gmra.mxu0 %vm70_vm1, %v1788_v29 }
 0x633   :  { %v1790_v30 = vpop.eup %1789 }
 0x634   :  { %v1792_v32 = vpop.eup %1791  ;;  %1754 = vmatprep.mubr.msk.f32.mxu0 %vm70_vm1, %v1790_v30 }
 0x635   :  { %1755 = vmatmul.mubr.msk.f32.gmra.mxu0 %vm70_vm1, %v1792_v32 }
 0x6d0   :  { %v852_v34 = vpop.f32.mrf.mxu0 }
 0x6d1   :  { %v853_v35 = vadd.f32 %v852_v34, %v197_v33 }
 0x6d2   :  { %v1695_v36 = vpop.f32.mrf.mxu0 }
 0x6d3   :  { %1793 = vtanh.f32 %v853_v35 }
 0x6e0   :  { %v1794_v37 = vpop.eup %1793 }
 0x6e1   :  { %v857_v2 = vsub.f32 %v779_v57, %v1794_v37 }
 0x6e3   :  { %v858_v3 = vmul.f32 %v1201_v1, %v857_v2 }
 0x6e5   :  { %v859_v6 = vadd.f32 %v1794_v37, %v858_v3 }
 0x6e7   :  { %1738 = vmatmul.mubr.f32.gmra.mxu1 %v859_v6  ;;  %862 = vst [vmem:[#allocation8] sm:$0xff] %v859_v6 }
 0x6ed   :  { %v1750_v10 = vpop.f32.mrf.mxu0 }
 0x6ee   :  { %v1114_v31 = vadd.f32 %v1750_v10, %v1203_v8 }
 0x6ef   :  { %v1108_v46 = vpop.f32.mrf.mxu0 }
 0x6f0   :  { %1148 = vst [vmem:[#allocation7 + $0x8] sm:$0xff] %v1114_v31  ;;  %v1109_v12 = vadd.f32 %v1203_v8, %v1108_v46 }
 0x6f1   :  { %v1753_v0 = vpop.f32.mrf.mxu0 }
 0x6f2   :  { %1147 = vst [vmem:[#allocation7] sm:$0xff] %v1109_v12  ;;  %v1124_v14 = vadd.f32 %v1753_v0, %v1203_v8 }
 0x6f3   :  { %v1118_v15 = vpop.f32.mrf.mxu0 }
 0x6f4   :  { %1150 = vst [vmem:[#allocation7 + $0x18] sm:$0xff] %v1124_v14  ;;  %v1119_v16 = vadd.f32 %v1203_v8, %v1118_v15 }
 0x6f5   :  { %v1756_v17 = vpop.f32.mrf.mxu0 }
 0x6f6   :  { %1149 = vst [vmem:[#allocation7 + $0x10] sm:$0xff] %v1119_v16  ;;  %v1134_v18 = vadd.f32 %v1756_v17, %v1203_v8 }
 0x6f7   :  { %v1128_v19 = vpop.f32.mrf.mxu0 }
 0x6f8   :  { %1152 = vst [vmem:[#allocation7 + $0x28] sm:$0xff] %v1134_v18  ;;  %v1129_v20 = vadd.f32 %v1203_v8, %v1128_v19 }
 0x6fa   :  { %1151 = vst [vmem:[#allocation7 + $0x20] sm:$0xff] %v1129_v20 }
 0x7a7   :  { %v1739_v21 = vpop.f32.mrf.mxu1 }
 0x7a8   :  { %v996_v22 = vadd.f32 %v1739_v21, %v2475_v60 }
 0x7a9   :  { %v990_v38 = vpop.f32.mrf.mxu1 }
 0x7aa   :  { %v991_v39 = vadd.f32 %v2475_v60, %v990_v38 }
 0x7ac   :  { %1795 = vtanh.f32 %v991_v39 }
 0x7ad   :  { %1797 = vtanh.f32 %v996_v22 }
 0x7b9   :  { %v1796_v40 = vpop.eup %1795 }
 0x7ba   :  { %v1798_v41 = vpop.eup %1797  ;;  %1757 = vmatprep.mubr.msk.f32.mxu0 %vm70_vm1, %v1796_v40 }
 0x7bb   :  { %1758 = vmatmul.mubr.msk.f32.gmra.mxu0 %vm70_vm1, %v1798_v41 }
 0x7bc   :  { %1830 = shalt.err (!%p1827_p9)
}
 0x7bd   :  { %1176 = dma.vmem_to_hbm [thread:$0]  %s1174_s9, 128, %s2518_s11, [#allocation9]  }
 0x7be   :  { %s1869_s25 = smov [#allocation7]  }
 0x7bf   :  { %s1160_s2 = sshll.u32 %s1869_s25, 4  ;;  %s1161_s2 = int_to_ptr.vmem [resolvable:$true] %s1160_s2 }
 0x7c0   :  { %s1839_s26 = scalar_lea.vmem %s1161_s2, 1024  ;;  %p1844_p11 = scmp.lt.s32.totalorder %s1161_s2, %s1161_s2 }
 0x7c1   :  { %p1840_p10 = scmp.ne.s32.totalorder %s1161_s2, %s1839_s26  ;;  %p1845_p12 = scmp.lt.s32.totalorder %s1839_s26, %s1839_s26 }
 0x7c3   :  { %p1846_p13 = por %p1845_p12, %p1844_p11 }
 0x7c5   :  { %p1847_p0 = pnand %p1846_p13, %p1840_p10 }
 0x87b   :  { %v1759_v42 = vpop.f32.mrf.mxu0 }
 0x87c   :  { %v1144_v43 = vadd.f32 %v1759_v42, %v1203_v8 }
 0x87d   :  { %v1138_v44 = vpop.f32.mrf.mxu0 }
 0x87e   :  { %1154 = vst [vmem:[#allocation7 + $0x38] sm:$0xff] %v1144_v43  ;;  %v1139_v45 = vadd.f32 %v1203_v8, %v1138_v44 }
 0x880   :  { %1153 = vst [vmem:[#allocation7 + $0x30] sm:$0xff] %v1139_v45 }
 0x881   :  { %1850 = shalt.err (!%p1847_p0)
}
 0x882   :  { %s1870_s27 = smov 128   ;;  %s1871_s28 = smov 8  }
 0x883   :  { %1166 = dma.vmem_to_hbm [thread:$0]  %s1161_s2, 1024, %s2517_s10, [#allocation6], %s1870_s27, %s1870_s27, %s1871_s28  }
 0x884   :  { %1861 = dma.done.wait [#allocation6], 1024  }
 0x885   :  { %1862 = vsyncadd [#allocation6], 4294966272 }
 0x886   :  { %1863 = dma.done.wait [#allocation9], 128  }
 0x887   :  { %1864 = vsyncadd [#allocation9], 4294967168 }
 0x888   :  { %1183 = vsyncpa [#allocation5], 1 }
 0x889   :  { %1184 = vsyncpa [#allocation6], 1 }
 0x88a   :  { %1185 = vsyncpa [#allocation9], 1 }

</bundles_post_ra>
